<compile_context>
chip_gen: v7x
topology: tpu7x:2x2x1
jax: 0.10.0
libtpu: 0.0.40
codegen_flags: <defaults>
</compile_context>

<pallas_src>
import jax
import jax.numpy as jnp
from jax import lax
from jax.experimental import pallas as pl
from jax.experimental.pallas import tpu as pltpu


# --------------------------------------------------------------------------
# Kernels
# --------------------------------------------------------------------------

def _pointwise_conv_kernel_2d(x_ref, w_ref, o_ref):
    # x_ref: (C_in, l_tile)   w_ref: (C_out, C_in)   o_ref: (C_out, l_tile)
    o_ref[...] = jnp.dot(
        w_ref[...], x_ref[...], preferred_element_type=jnp.float32
    ).astype(o_ref.dtype)


def _make_pointwise_conv_kernel_3d(b_tile):
    # x_ref: (b_tile, C_in, l_tile)   o_ref: (b_tile, C_out, l_tile)
    def kernel(x_ref, w_ref, o_ref):
        w = w_ref[...]  # hoist: weight loaded once per grid step

        def one(b):
            o_ref[b] = jnp.dot(
                w, x_ref[b], preferred_element_type=jnp.float32
            ).astype(o_ref.dtype)

        if b_tile <= 8:
            for b in range(b_tile):          # small static unroll
                one(b)
        else:
            # Bounded live ranges for larger batch folds; the kernel is
            # DMA-bound, so per-iteration loop overhead is irrelevant.
            def body(b, carry):
                one(b)
                return carry
            lax.fori_loop(0, b_tile, body, 0)

    return kernel


# --------------------------------------------------------------------------
# Tile selection helpers
# --------------------------------------------------------------------------

def _round_up(x, m):
    return (x + m - 1) // m * m


def _vmem_capacity_bytes():
    try:
        info = pltpu.get_tpu_info()
        cap = getattr(info, "vmem_capacity_bytes", None)
        if cap:
            return int(cap)
    except Exception:
        pass
    return 64 * 1024 * 1024  # conservative (v7x per-TensorCore VMEM)


def _largest_divisor_leq(n, cap):
    cap = max(1, min(n, cap))
    for d in range(cap, 0, -1):
        if n % d == 0:
            return d
    return 1


def _sublane_rows(c, itemsize):
    # Rows after padding to the dtype's minimum sublane tile
    # (8 for 4-byte, 16 for 2-byte, 32 for 1-byte elements).
    min_sub = 8 * max(1, 4 // max(1, itemsize))
    return _round_up(c, min_sub)


def _choose_tiles(B, C_in, C_out, L, itemsize, block_bytes_target=None):
    """Pick (b_tile, l_tile) from a per-grid-step byte target.

    The combined (x + out) block per step is sized to a few MiB so the
    ~0.35 us per-step overhead is amortized (near the HBM roofline) while the
    double-buffered footprint (+ resident weight) stays within a
    per-generation VMEM budget.
    """
    vmem_cap = _vmem_capacity_bytes()
    w_bytes = _sublane_rows(C_out, itemsize) * _round_up(C_in, 128) * itemsize
    # Double-buffered x+out blocks + weight + compiler scratch under ~3/4 VMEM.
    budget = vmem_cap * 3 // 4 - 2 * w_bytes - (4 << 20)

    if block_bytes_target is None:
        if vmem_cap <= 64 * 1024 * 1024:      # v7x: 64 MiB/TC, ~3.2 TB/s HBM
            target = 6 * 1024 * 1024
        else:                                 # v5e / v6e: 128 MiB VMEM
            target = 3 * 1024 * 1024
        max_block_bytes = max(256 * 1024, min(target, budget // 2))
    else:
        # Explicit override (mainly for testing the L-tiled path at small L).
        max_block_bytes = max(4096, min(int(block_bytes_target), budget // 2))

    # Padded bytes per lane-column of the combined (x + out) block, per sample.
    bytes_per_lane = (_sublane_rows(C_in, itemsize)
                      + _sublane_rows(C_out, itemsize)) * itemsize
    per_sample_bytes = bytes_per_lane * _round_up(L, 128)

    if per_sample_bytes >= max_block_bytes:
        # Large per-sample L: tile along L (multiple of 128); the last L block
        # may be ragged -- Pallas masks it on writeback, no wrapper pad needed.
        b_tile = 1
        l_tile = max(128, (max_block_bytes // bytes_per_lane) // 128 * 128)
        if l_tile >= L:
            l_tile = L
    else:
        # Small per-sample L: whole L per step; fold batch samples together to
        # keep each DMA block near the byte target.
        l_tile = L
        b_tile = _largest_divisor_leq(
            B, max(1, max_block_bytes // per_sample_bytes))
        # Keep enough grid steps for pipelining / megacore sharding, but never
        # shrink blocks below ~1 MiB just to create steps.
        min_steps = 8
        min_block_bytes = 1 << 20
        while b_tile > 1 and (B // b_tile) < min_steps:
            cand = _largest_divisor_leq(B, b_tile - 1)
            if cand * per_sample_bytes < min_block_bytes:
                break
            b_tile = cand
    return b_tile, l_tile


# --------------------------------------------------------------------------
# Wrapper
# --------------------------------------------------------------------------

def flattened_1d_conv(x, weight, *, block_bytes_target=None):
    """Apply a kernel_size=1 Conv1d over all flattened non-(batch,channel) dims.

    x:      (B, C_in, d1, d2, ...)
    weight: (C_out, C_in, 1)   (PyTorch Conv1d weight layout, kernel_size=1)
    block_bytes_target: optional override for the per-grid-step byte target.
    returns (B, C_out, d1, d2, ...), same dtype as x.
    """
    size = list(x.shape)
    B, C_in = size[0], size[1]
    spatial = size[2:]
    L = 1
    for d in spatial:
        L *= d
    C_out, w_cin, ks = weight.shape
    assert w_cin == C_in
    assert ks == 1  # TODO(synk): kernel_size > 1 unsupported (module's own reshape breaks too)

    x_flat = x.reshape(B, C_in, L)
    w2d = weight.reshape(C_out, C_in)
    itemsize = x_flat.dtype.itemsize
    out_dtype = x_flat.dtype

    b_tile, l_tile = _choose_tiles(
        B, C_in, C_out, L, itemsize, block_bytes_target)

    grid_b = B // b_tile            # b_tile always divides B
    grid_l = pl.cdiv(L, l_tile)     # last L block may be ragged (masked store)

    if b_tile == 1:
        kernel = _pointwise_conv_kernel_2d
        x_block = (pl.Squeezed(), C_in, l_tile)   # kernel sees 2-D tiles
        o_block = (pl.Squeezed(), C_out, l_tile)
    else:
        kernel = _make_pointwise_conv_kernel_3d(b_tile)
        x_block = (b_tile, C_in, l_tile)
        o_block = (b_tile, C_out, l_tile)

    # Put the larger extent on the leading grid axis so megacore sharding
    # (v7x: 2 TensorCores) splits real work even when B == 1.
    if grid_l > grid_b:
        grid = (grid_l, grid_b)
        xo_map = lambda l, b: (b, 0, l)
        w_map = lambda l, b: (0, 0)
    else:
        grid = (grid_b, grid_l)
        xo_map = lambda b, l: (b, 0, l)
        w_map = lambda b, l: (0, 0)

    # VMEM footprint: double-buffered x/out blocks + (double-buffered) weight
    # + fixed compiler-scratch headroom.  No double counting of buffering.
    lanes_pad = _round_up(l_tile, 128)
    block_bytes = b_tile * (_sublane_rows(C_in, itemsize)
                            + _sublane_rows(C_out, itemsize)) * lanes_pad * itemsize
    w_bytes = _sublane_rows(C_out, itemsize) * _round_up(C_in, 128) * itemsize
    vmem_cap = _vmem_capacity_bytes()
    vmem_limit = int(min(vmem_cap * 3 // 4,
                         2 * block_bytes + 2 * w_bytes + (8 << 20)))

    cost = pl.CostEstimate(
        flops=2 * B * C_out * C_in * L,
        transcendentals=0,
        bytes_accessed=itemsize * (B * L * (C_in + C_out)) + itemsize * C_out * C_in,
    )

    out_flat = pl.pallas_call(
        kernel,
        out_shape=jax.ShapeDtypeStruct((B, C_out, L), out_dtype),
        grid_spec=pltpu.PrefetchScalarGridSpec(
            num_scalar_prefetch=0,
            grid=grid,
            in_specs=[
                pl.BlockSpec(x_block, xo_map),
                # Constant index map -> weight is DMA'd once and stays resident.
                pl.BlockSpec((C_out, C_in), w_map),
            ],
            out_specs=pl.BlockSpec(o_block, xo_map),
        ),
        compiler_params=pltpu.CompilerParams(
            dimension_semantics=("parallel", "parallel"),
            vmem_limit_bytes=vmem_limit,
        ),
        cost_estimate=cost,
    )(x_flat, w2d)

    return out_flat.reshape(B, C_out, *spatial)


# --------------------------------------------------------------------------
# Demo / correctness checks
# --------------------------------------------------------------------------

def _run_check(key, B, C_in, C_out, spatial, **kwargs):
    k_x, k_w = jax.random.split(key)
    x = jax.random.normal(k_x, (B, C_in, *spatial), dtype=jnp.float32)
    bound = 1.0 / (C_in ** 0.5)
    weight = jax.random.uniform(
        k_w, (C_out, C_in, 1), dtype=jnp.float32, minval=-bound, maxval=bound)

    y = flattened_1d_conv(x, weight, **kwargs)
    y = jax.block_until_ready(y)

    # Pure-JAX reference: pointwise conv == channel contraction.
    L = 1
    for d in spatial:
        L *= d
    y_ref = jnp.einsum(
        "oi,bil->bol", weight.reshape(C_out, C_in), x.reshape(B, C_in, L)
    ).reshape(B, C_out, *spatial)

    assert y.shape == (B, C_out, *spatial)
    assert bool(jnp.allclose(y, y_ref, atol=1e-3, rtol=1e-3)), (
        f"mismatch for shape {(B, C_in, *spatial)}")


if __name__ == "__main__":
    key = jax.random.PRNGKey(0)
    k1, k2, k3 = jax.random.split(key, 3)

    # 1) Module-typical small shape: batch-folded (b_tile=2) 3-D kernel path.
    _run_check(k1, B=2, C_in=4, C_out=8, spatial=(16, 16))

    # 2) L-tiled path with a ragged last L block and L-major grid ordering
    #    (forced small per-step byte target so it triggers at small shapes).
    _run_check(k2, B=1, C_in=8, C_out=8, spatial=(24, 25),
               block_bytes_target=16 * 1024)

    # 3) Larger batch fold exercising the fori_loop body (b_tile > 8).
    _run_check(k3, B=16, C_in=4, C_out=4, spatial=(8, 8))

    print("KERNEL_OK")
</pallas_src>

<mosaic_0001>
module attributes {stable_mosaic.version = 11 : i64} {
  func.func @kernel(%arg0: i32, %arg1: i32, %arg2: memref<2x4x256xf32, #tpu.memory_space<vmem>>, %arg3: memref<8x4xf32, #tpu.memory_space<vmem>>, %arg4: memref<2x8x256xf32, #tpu.memory_space<vmem>>) attributes {dimension_semantics = [#tpu.dimension_semantics<parallel>, #tpu.dimension_semantics<parallel>], iteration_bounds = array<i64: 1, 1>, scalar_prefetch = 0 : i64, scratch_operands = 0 : i64, tpu.core_type = #tpu.core_type<tc>, window_params = [{transform_indices = @transform_0, window_bounds = array<i64: 2, 4, 256>}, {pipeline_mode = #tpu.pipeline_mode<synchronous>, transform_indices = @transform_1, window_bounds = array<i64: 8, 4>}, {transform_indices = @transform_2, window_bounds = array<i64: 2, 8, 256>}]} {
    %c0 = arith.constant 0 : index
    %c0_0 = arith.constant 0 : index
    %0 = vector.load %arg3[%c0, %c0_0] : memref<8x4xf32, #tpu.memory_space<vmem>>, vector<8x4xf32>
    %c0_1 = arith.constant 0 : index
    %c0_2 = arith.constant 0 : index
    %c0_3 = arith.constant 0 : index
    %1 = vector.load %arg2[%c0_1, %c0_2, %c0_3] : memref<2x4x256xf32, #tpu.memory_space<vmem>>, vector<1x4x256xf32>
    %2 = vector.shape_cast %1 : vector<1x4x256xf32> to vector<4x256xf32>
    %cst = arith.constant dense<0.000000e+00> : vector<8x256xf32>
    %3 = tpu.matmul %0, %2, %cst {dimension_numbers = #tpu.dot_dimension_numbers<[1], [0], [0], [1], [0, 0, 1, 1], [], []>} : vector<8x4xf32>, vector<4x256xf32>, vector<8x256xf32> -> vector<8x256xf32>
    %c0_4 = arith.constant 0 : index
    %c0_5 = arith.constant 0 : index
    %c0_6 = arith.constant 0 : index
    %4 = vector.load %arg4[%c0_4, %c0_5, %c0_6] : memref<2x8x256xf32, #tpu.memory_space<vmem>>, vector<1x8x256xf32>
    %5 = vector.shape_cast %4 : vector<1x8x256xf32> to vector<8x256xf32>
    %6 = vector.shape_cast %3 : vector<8x256xf32> to vector<1x8x256xf32>
    tpu.vector_store %arg4[%c0_4, %c0_5, %c0_6], %6 {strides = array<i32>} : memref<2x8x256xf32, #tpu.memory_space<vmem>>, vector<1x8x256xf32>,
    %c1 = arith.constant 1 : index
    %c0_7 = arith.constant 0 : index
    %c0_8 = arith.constant 0 : index
    %7 = vector.load %arg2[%c1, %c0_7, %c0_8] : memref<2x4x256xf32, #tpu.memory_space<vmem>>, vector<1x4x256xf32>
    %8 = vector.shape_cast %7 : vector<1x4x256xf32> to vector<4x256xf32>
    %cst_9 = arith.constant dense<0.000000e+00> : vector<8x256xf32>
    %9 = tpu.matmul %0, %8, %cst_9 {dimension_numbers = #tpu.dot_dimension_numbers<[1], [0], [0], [1], [0, 0, 1, 1], [], []>} : vector<8x4xf32>, vector<4x256xf32>, vector<8x256xf32> -> vector<8x256xf32>
    %c1_10 = arith.constant 1 : index
    %c0_11 = arith.constant 0 : index
    %c0_12 = arith.constant 0 : index
    %10 = vector.load %arg4[%c1_10, %c0_11, %c0_12] : memref<2x8x256xf32, #tpu.memory_space<vmem>>, vector<1x8x256xf32>
    %11 = vector.shape_cast %10 : vector<1x8x256xf32> to vector<8x256xf32>
    %12 = vector.shape_cast %9 : vector<8x256xf32> to vector<1x8x256xf32>
    tpu.vector_store %arg4[%c1_10, %c0_11, %c0_12], %12 {strides = array<i32>} : memref<2x8x256xf32, #tpu.memory_space<vmem>>, vector<1x8x256xf32>,
    return
  }
  func.func @transform_0(%arg0: i32, %arg1: i32) -> (i32, i32, i32) {
    %c0_i32 = arith.constant 0 : i32
    %c0_i32_0 = arith.constant 0 : i32
    return %arg0, %c0_i32, %arg1 : i32, i32, i32
  }
  func.func @transform_1(%arg0: i32, %arg1: i32) -> (i32, i32) {
    %c0_i32 = arith.constant 0 : i32
    %c0_i32_0 = arith.constant 0 : i32
    %c0_i32_1 = arith.constant 0 : i32
    return %c0_i32, %c0_i32_0 : i32, i32
  }
  func.func @transform_2(%arg0: i32, %arg1: i32) -> (i32, i32, i32) {
    %c0_i32 = arith.constant 0 : i32
    %c0_i32_0 = arith.constant 0 : i32
    return %arg0, %c0_i32, %arg1 : i32, i32, i32
  }
}

</mosaic_0001>

<bundles_post_ra>
// kernel: tpu_custom_call.1
= control target key start
LH: loop header
LB: loop body
LE: loop exit
PB: predicated region body
PF: predicated region fallthrough
CT: control target
= control target key end

     0   :  { %7 = vsyncpa [#allocation3], 0  ;;  %s323_s0 = inlined_call_operand.hbm [shape: f32[2,4,256], index: 0, kind: input, shape index: {}]   ;;  %s324_s1 = inlined_call_operand.vmem [shape: f32[8,4], index: 1, kind: input, shape index: {}]   ;;  %s325_s2 = inlined_call_operand.hbm [shape: f32[2,8,256], index: 2, kind: output, shape index: {}]  }
   0x1   :  { %8 = vsyncpa [#allocation4], 0  ;;  %s274_s9 = smov [#allocation2]   ;;  %s226_s13 = scalar_lea.hbm %s323_s0, 256 }
   0x2   :  { %s14_s10 = sshll.u32 %s274_s9, 4  ;;  %p227_p0 = scmp.ne.s32.totalorder %s323_s0, %s226_s13  ;;  %s15_s10 = int_to_ptr.vmem [resolvable:$true] %s14_s10 }
   0x3   :  { %p230_p1 = scmp.lt.u32.totalorder %s226_s13, %s323_s0 }
   0x5   :  { %p232_p2 = pnand %p230_p1, %p227_p0 }
   0x7   :  { %235 = shalt.err (!%p232_p2)
}
   0x8   :  { %s236_s18 = scalar_lea.vmem %s15_s10, 256  ;;  %p241_p4 = scmp.lt.s32.totalorder %s15_s10, %s15_s10 }
   0x9   :  { %p237_p3 = scmp.ne.s32.totalorder %s15_s10, %s236_s18  ;;  %p242_p5 = scmp.lt.s32.totalorder %s236_s18, %s236_s18 }
   0xb   :  { %p243_p6 = por %p242_p5, %p241_p4 }
   0xd   :  { %p244_p7 = pnand %p243_p6, %p237_p3 }
   0xf   :  { %247 = shalt.err (!%p244_p7)
}
  0x10   :  { %s275_s19 = smov 128   ;;  %s276_s20 = smov 8  }
  0x11   :  { %20 = dma.hbm_to_vmem [thread:$0]  %s323_s0, 256, %s15_s10, [#allocation3], %s275_s19, %s275_s19, %s276_s20  }
  0x12   :  { %270 = dma.done.wait [#allocation3], 256  }
  0x13   :  { %271 = vsyncadd [#allocation3], 4294967040  ;;  %v277_v0 = vmov 0.0   ;;  %v27_v1 = vld [vmem:[#allocation2] sm:$0xff]  ;;  %vm34_vm0 = vcmask 1043456   ;;  %v113_v2 = vld [vmem:[#allocation2 + $0x8] sm:$0xff] }
  0x14   :  { %103 = vmatprep.mubr.f32.mxu0 %v277_v0  ;;  %184 = vmatprep.mubr.f32.mxu1 %v277_v0  ;;  %v29_v3 = vcombine.high %v27_v1, %v27_v1  ;;  %v115_v4 = vcombine.high %v113_v2, %v113_v2  ;;  %v26_v5 = vld [vmem:[%s324_s1] sm:$0xff]  ;;  %vm30_vm1 = vcmask 31744   ;;  %s278_s0 = smov [#allocation5]  }
  0x15   :  { %s199_s25 = sshll.u32 %s278_s0, 4  ;;  %s200_s25 = int_to_ptr.vmem [resolvable:$true] %s199_s25 }
  0x16   :  { %211 = vmatprep.subr.msk.mxu0 %vm34_vm0, %v29_v3  ;;  %214 = vmatprep.subr.msk.mxu1 %vm34_vm0, %v115_v4  ;;  %s248_s26 = scalar_lea.vmem %s200_s25, 512  ;;  %p253_p9 = scmp.lt.s32.totalorder %s200_s25, %s200_s25 }
  0x17   :  { %212 = vmatpush1.msk.msra.mxu0 %vm34_vm0, %v27_v1  ;;  %215 = vmatpush1.msk.msra.mxu1 %vm34_vm0, %v113_v2  ;;  %p249_p8 = scmp.ne.s32.totalorder %s200_s25, %s248_s26  ;;  %p254_p10 = scmp.lt.s32.totalorder %s248_s26, %s248_s26 }
  0x18   :  { %213 = vmatmul.mubr.msk.f32.vlgmr.msra.gmra.mrb[0].mxu0 %vm30_vm1, %v26_v5  ;;  %216 = vmatmul.mubr.msk.f32.vlgmr.msra.gmra.mrb[0].mxu1 %vm30_vm1, %v26_v5 }
  0x19   :  { %p255_p11 = por %p254_p10, %p253_p9 }
  0x1b   :  { %p256_p12 = pnand %p255_p11, %p249_p8 }
  0xeb   :  { %v105_v6 = vpop.f32.mrb[0].mxu0  ;;  %v186_v7 = vpop.f32.mrb[0].mxu1 }
  0xec   :  { %110 = vst [vmem:[#allocation5] sm:$0xff] %v105_v6  ;;  %192 = vst [vmem:[#allocation5 + $0x10] sm:$0xff] %v186_v7  ;;  %v107_v8 = vpop.f32.mrb[1].mxu0  ;;  %v188_v9 = vpop.f32.mrb[1].mxu1 }
  0xed   :  { %111 = vst [vmem:[#allocation5 + $0x8] sm:$0xff] %v107_v8  ;;  %193 = vst [vmem:[#allocation5 + $0x18] sm:$0xff] %v188_v9 }
  0xee   :  { %259 = shalt.err (!%p256_p12)
}
  0xef   :  { %s260_s28 = scalar_lea.hbm %s325_s2, 512 }
  0xf0   :  { %p261_p13 = scmp.ne.s32.totalorder %s325_s2, %s260_s28  ;;  %p264_p0 = scmp.lt.u32.totalorder %s260_s28, %s325_s2 }
  0xf2   :  { %p266_p1 = pnand %p264_p0, %p261_p13 }
  0xf4   :  { %269 = shalt.err (!%p266_p1)
}
  0xf5   :  { %s279_s5 = smov 256   ;;  %s280_s6 = smov 16  }
  0xf6   :  { %205 = dma.vmem_to_hbm [thread:$0]  %s200_s25, 512, %s325_s2, [#allocation4], %s279_s5, %s279_s5, %s280_s6  }
  0xf7   :  { %272 = dma.done.wait [#allocation4], 512  }
  0xf8   :  { %273 = vsyncadd [#allocation4], 4294966784 }
  0xf9   :  { %209 = vsyncpa [#allocation3], 1 }
  0xfa   :  { %210 = vsyncpa [#allocation4], 1 }

</bundles_post_ra>
